<compile_context>
chip_gen: v6e
topology: v6e:2x2x1
jax: 0.10.0
libtpu: 0.0.40
codegen_flags: <defaults>
</compile_context>

<pallas_src>
import math

import jax
import jax.numpy as jnp
from jax.experimental import pallas as pl
from jax.experimental.pallas import tpu as pltpu

_INV_SQRT2 = 1.0 / math.sqrt(2.0)
_LANE = 128


def _round_up(n: int, m: int) -> int:
    return ((n + m - 1) // m) * m


def cls_head_kernel(x_ref, w1_ref, b1_ref, w2_ref, b2_ref, o_ref):
    x = x_ref[...]                                             # (TB, dim_in) bf16

    # Linear 1: bf16 MXU pass, f32 accumulate, f32 bias add.
    h = jnp.dot(x, w1_ref[...], preferred_element_type=jnp.float32) + b1_ref[...]

    # Dropout (eval mode) -> identity.

    # GELU (exact erf form -- matches nn.GELU() default), kept in f32 (v5e-safe).
    h = 0.5 * h * (1.0 + jax.lax.erf(h * _INV_SQRT2))

    # Linear 2: downcast activation to bf16 for a native-rate MXU pass, f32 acc.
    logits = jnp.dot(h.astype(jnp.bfloat16), w2_ref[...],
                     preferred_element_type=jnp.float32) + b2_ref[...]

    # Softmax over the lane-dense (padded-to-128) label axis. Padded lanes carry
    # a -1e30 bias, so exp underflows to exactly 0 and they drop out of the sum.
    m = jnp.max(logits, axis=-1, keepdims=True)
    e = jnp.exp(logits - m)
    denom = jnp.sum(e, axis=-1, keepdims=True)
    o_ref[...] = e * pl.reciprocal(denom, approx=True)         # EUP, not VALU divide


def cls_head_forward(x, w1, b1, w2, b2, *, tile_b=256):
    """x:(B,dim_in) f32; w1:(dim_in,hidden); b1:(hidden,); w2:(hidden,L); b2:(L,)."""
    B, dim_in = x.shape
    hidden = w1.shape[1]
    num_labels = w2.shape[1]

    # --- Lane-dense padded label axis (43 -> 128). ---
    padded_labels = _round_up(max(num_labels, _LANE), _LANE)
    w2_p = jnp.zeros((hidden, padded_labels), jnp.bfloat16)
    w2_p = w2_p.at[:, :num_labels].set(w2.astype(jnp.bfloat16))
    b2_p = jnp.full((1, padded_labels), -1e30, jnp.float32)
    b2_p = b2_p.at[:, :num_labels].set(b2.reshape(1, -1).astype(jnp.float32))

    # --- bf16 MXU operands; biases stay f32 (added onto the f32 accumulator). ---
    x_b = x.astype(jnp.bfloat16)
    w1_b = w1.astype(jnp.bfloat16)
    b1_f = b1.reshape(1, -1).astype(jnp.float32)

    # --- Batch grid. Weights are VMEM-resident (constant index maps); x / out are
    # pipelined per batch tile. Tile kept small vs. v7x's 64 MiB VMEM budget. ---
    tile_b = min(tile_b, _round_up(B, 16))      # 16: clean bf16 sublane packing
    b_pad = _round_up(B, tile_b)
    if b_pad != B:
        x_b = jnp.pad(x_b, ((0, b_pad - B), (0, 0)))
    grid = (b_pad // tile_b,)

    flops = 2 * b_pad * (dim_in * hidden + hidden * padded_labels)
    transcendentals = b_pad * (hidden + padded_labels)          # erf + exp
    bytes_accessed = (b_pad * dim_in * 2 + dim_in * hidden * 2 + hidden * 4 +
                      hidden * padded_labels * 2 + padded_labels * 4 +
                      b_pad * padded_labels * 4)

    out = pl.pallas_call(
        cls_head_kernel,
        out_shape=jax.ShapeDtypeStruct((b_pad, padded_labels), jnp.float32),
        grid_spec=pltpu.PrefetchScalarGridSpec(
            num_scalar_prefetch=0,
            grid=grid,
            in_specs=[
                pl.BlockSpec((tile_b, dim_in), lambda i: (i, 0)),        # x tile
                pl.BlockSpec((dim_in, hidden), lambda i: (0, 0)),        # w1 resident
                pl.BlockSpec((1, hidden), lambda i: (0, 0)),             # b1 resident
                pl.BlockSpec((hidden, padded_labels), lambda i: (0, 0)), # w2 resident
                pl.BlockSpec((1, padded_labels), lambda i: (0, 0)),      # b2 resident
            ],
            out_specs=pl.BlockSpec((tile_b, padded_labels), lambda i: (i, 0)),
        ),
        compiler_params=pltpu.CompilerParams(
            dimension_semantics=("parallel",),   # shards batch tiles across v7x's 2 TCs
        ),
        cost_estimate=pl.CostEstimate(
            flops=flops,
            transcendentals=transcendentals,
            bytes_accessed=bytes_accessed,
        ),
    )(x_b, w1_b, b1_f, w2_p, b2_p)

    return out[:B, :num_labels]


def reference_forward(x, w1, b1, w2, b2):
    """Pure-JAX reference mirroring the kernel's bf16-operand / f32-accumulate math."""
    xb = x.astype(jnp.bfloat16)
    h = jnp.dot(xb, w1.astype(jnp.bfloat16),
                preferred_element_type=jnp.float32) + b1.astype(jnp.float32)
    h = 0.5 * h * (1.0 + jax.lax.erf(h * _INV_SQRT2))
    logits = jnp.dot(h.astype(jnp.bfloat16), w2.astype(jnp.bfloat16),
                     preferred_element_type=jnp.float32) + b2.astype(jnp.float32)
    return jax.nn.softmax(logits, axis=-1)


if __name__ == "__main__":
    # Module defaults: dim_in=256, dims=[512], num_labels=43.
    dim_in, hidden, num_labels = 256, 512, 43
    batch = 8

    key = jax.random.PRNGKey(0)
    kx, k1, kb1, k2, kb2 = jax.random.split(key, 5)

    x = jax.random.normal(kx, (batch, dim_in), dtype=jnp.float32)

    # Deterministic PyTorch-Linear-style uniform init, stored pre-transposed (in, out).
    bound1 = 1.0 / math.sqrt(dim_in)
    w1 = jax.random.uniform(k1, (dim_in, hidden), jnp.float32, -bound1, bound1)
    b1 = jax.random.uniform(kb1, (hidden,), jnp.float32, -bound1, bound1)

    bound2 = 1.0 / math.sqrt(hidden)
    w2 = jax.random.uniform(k2, (hidden, num_labels), jnp.float32, -bound2, bound2)
    b2 = jax.random.uniform(kb2, (num_labels,), jnp.float32, -bound2, bound2)

    out = cls_head_forward(x, w1, b1, w2, b2)
    out = jax.block_until_ready(out)

    ref = reference_forward(x, w1, b1, w2, b2)
    assert out.shape == (batch, num_labels)
    # approx reciprocal + bf16 matmul operands -> slightly looser tolerances
    assert jnp.allclose(jnp.sum(out, axis=-1), 1.0, atol=2e-3)
    assert jnp.allclose(out, ref, atol=2e-3, rtol=2e-2)

    print("KERNEL_OK")
</pallas_src>

<mosaic_0001>
module attributes {stable_mosaic.version = 11 : i64} {
  func.func @cls_head_kernel(%arg0: i32, %arg1: memref<16x256xbf16, #tpu.memory_space<vmem>>, %arg2: memref<256x512xbf16, #tpu.memory_space<vmem>>, %arg3: memref<1x512xf32, #tpu.memory_space<vmem>>, %arg4: memref<512x128xbf16, #tpu.memory_space<vmem>>, %arg5: memref<1x128xf32, #tpu.memory_space<vmem>>, %arg6: memref<16x128xf32, #tpu.memory_space<vmem>>) attributes {dimension_semantics = [#tpu.dimension_semantics<parallel>], iteration_bounds = array<i64: 1>, scalar_prefetch = 0 : i64, scratch_operands = 0 : i64, tpu.core_type = #tpu.core_type<tc>, window_params = [{transform_indices = @transform_0, window_bounds = array<i64: 16, 256>}, {pipeline_mode = #tpu.pipeline_mode<synchronous>, transform_indices = @transform_1, window_bounds = array<i64: 256, 512>}, {pipeline_mode = #tpu.pipeline_mode<synchronous>, transform_indices = @transform_2, window_bounds = array<i64: 1, 512>}, {pipeline_mode = #tpu.pipeline_mode<synchronous>, transform_indices = @transform_3, window_bounds = array<i64: 512, 128>}, {pipeline_mode = #tpu.pipeline_mode<synchronous>, transform_indices = @transform_4, window_bounds = array<i64: 1, 128>}, {transform_indices = @transform_5, window_bounds = array<i64: 16, 128>}]} {
    %c0 = arith.constant 0 : index
    %c0_0 = arith.constant 0 : index
    %0 = vector.load %arg1[%c0, %c0_0] : memref<16x256xbf16, #tpu.memory_space<vmem>>, vector<16x256xbf16>
    %c0_1 = arith.constant 0 : index
    %c0_2 = arith.constant 0 : index
    %1 = vector.load %arg2[%c0_1, %c0_2] : memref<256x512xbf16, #tpu.memory_space<vmem>>, vector<256x512xbf16>
    %cst = arith.constant dense<0.000000e+00> : vector<16x512xf32>
    %2 = tpu.matmul %0, %1, %cst {dimension_numbers = #tpu.dot_dimension_numbers<[1], [0], [0], [1], [0, 0, 1, 1], [], []>} : vector<16x256xbf16>, vector<256x512xbf16>, vector<16x512xf32> -> vector<16x512xf32>
    %c0_3 = arith.constant 0 : index
    %c0_4 = arith.constant 0 : index
    %3 = vector.load %arg3[%c0_3, %c0_4] : memref<1x512xf32, #tpu.memory_space<vmem>>, vector<1x512xf32>
    %4 = vector.broadcast %3 : vector<1x512xf32> to vector<16x512xf32>
    %5 = arith.addf %2, %4 : vector<16x512xf32>
    %cst_5 = arith.constant 5.000000e-01 : f32
    %6 = vector.broadcast %cst_5 : f32 to vector<16x512xf32>
    %7 = arith.mulf %6, %5 : vector<16x512xf32>
    %cst_6 = arith.constant 0.707106769 : f32
    %8 = vector.broadcast %cst_6 : f32 to vector<16x512xf32>
    %9 = arith.mulf %5, %8 : vector<16x512xf32>
    %10 = math.erf %9 : vector<16x512xf32>
    %cst_7 = arith.constant 1.000000e+00 : f32
    %11 = vector.broadcast %cst_7 : f32 to vector<16x512xf32>
    %12 = arith.addf %11, %10 : vector<16x512xf32>
    %13 = arith.mulf %7, %12 : vector<16x512xf32>
    %14 = arith.truncf %13 : vector<16x512xf32> to vector<16x512xbf16>
    %c0_8 = arith.constant 0 : index
    %c0_9 = arith.constant 0 : index
    %15 = vector.load %arg4[%c0_8, %c0_9] : memref<512x128xbf16, #tpu.memory_space<vmem>>, vector<512x128xbf16>
    %cst_10 = arith.constant dense<0.000000e+00> : vector<16x128xf32>
    %16 = tpu.matmul %14, %15, %cst_10 {dimension_numbers = #tpu.dot_dimension_numbers<[1], [0], [0], [1], [0, 0, 1, 1], [], []>} : vector<16x512xbf16>, vector<512x128xbf16>, vector<16x128xf32> -> vector<16x128xf32>
    %c0_11 = arith.constant 0 : index
    %c0_12 = arith.constant 0 : index
    %17 = vector.load %arg5[%c0_11, %c0_12] : memref<1x128xf32, #tpu.memory_space<vmem>>, vector<1x128xf32>
    %18 = vector.broadcast %17 : vector<1x128xf32> to vector<16x128xf32>
    %19 = arith.addf %16, %18 : vector<16x128xf32>
    %cst_13 = arith.constant dense<0xFF800000> : vector<16xf32>
    %20 = vector.multi_reduction <maximumf>, %19, %cst_13 [1] : vector<16x128xf32> to vector<16xf32>
    %21 = vector.shape_cast %20 : vector<16xf32> to vector<16x1xf32>
    %22 = vector.broadcast %21 : vector<16x1xf32> to vector<16x128xf32>
    %23 = arith.subf %19, %22 : vector<16x128xf32>
    %24 = math.exp %23 : vector<16x128xf32>
    %cst_14 = arith.constant dense<0.000000e+00> : vector<16xf32>
    %25 = vector.multi_reduction <add>, %24, %cst_14 [1] : vector<16x128xf32> to vector<16xf32>
    %26 = vector.shape_cast %25 : vector<16xf32> to vector<16x1xf32>
    %27 = tpu.reciprocal %26 {approx = true} : vector<16x1xf32> -> vector<16x1xf32>
    %28 = vector.broadcast %27 : vector<16x1xf32> to vector<16x128xf32>
    %29 = arith.mulf %24, %28 : vector<16x128xf32>
    %c0_15 = arith.constant 0 : index
    %c0_16 = arith.constant 0 : index
    %30 = vector.load %arg6[%c0_15, %c0_16] : memref<16x128xf32, #tpu.memory_space<vmem>>, vector<16x128xf32>
    tpu.vector_store %arg6[%c0_15, %c0_16], %29 {strides = array<i32>} : memref<16x128xf32, #tpu.memory_space<vmem>>, vector<16x128xf32>,
    return
  }
  func.func @transform_0(%arg0: i32) -> (i32, i32) {
    %c0_i32 = arith.constant 0 : i32
    %c0_i32_0 = arith.constant 0 : i32
    return %arg0, %c0_i32 : i32, i32
  }
  func.func @transform_1(%arg0: i32) -> (i32, i32) {
    %c0_i32 = arith.constant 0 : i32
    %c0_i32_0 = arith.constant 0 : i32
    %c0_i32_1 = arith.constant 0 : i32
    return %c0_i32, %c0_i32_0 : i32, i32
  }
  func.func @transform_2(%arg0: i32) -> (i32, i32) {
    %c0_i32 = arith.constant 0 : i32
    %c0_i32_0 = arith.constant 0 : i32
    %c0_i32_1 = arith.constant 0 : i32
    return %c0_i32, %c0_i32_0 : i32, i32
  }
  func.func @transform_3(%arg0: i32) -> (i32, i32) {
    %c0_i32 = arith.constant 0 : i32
    %c0_i32_0 = arith.constant 0 : i32
    %c0_i32_1 = arith.constant 0 : i32
    return %c0_i32, %c0_i32_0 : i32, i32
  }
  func.func @transform_4(%arg0: i32) -> (i32, i32) {
    %c0_i32 = arith.constant 0 : i32
    %c0_i32_0 = arith.constant 0 : i32
    %c0_i32_1 = arith.constant 0 : i32
    return %c0_i32, %c0_i32_0 : i32, i32
  }
  func.func @transform_5(%arg0: i32) -> (i32, i32) {
    %c0_i32 = arith.constant 0 : i32
    %c0_i32_0 = arith.constant 0 : i32
    return %arg0, %c0_i32 : i32, i32
  }
}

</mosaic_0001>

<bundles_post_ra>
// kernel: tpu_custom_call.1
= control target key start
LH: loop header
LB: loop body
LE: loop exit
PB: predicated region body
PF: predicated region fallthrough
CT: control target
= control target key end

     0   :  { %10 = vsyncpa [#allocation3], 0  ;;  %s1489_s0 = inlined_call_operand.hbm [shape: bf16[16,256], index: 0, kind: input, shape index: {}]   ;;  %s1490_s1 = inlined_call_operand.hbm [shape: bf16[256,512], index: 1, kind: input, shape index: {}]   ;;  %s1491_s2 = inlined_call_operand.hbm [shape: f32[1,512], index: 2, kind: input, shape index: {}]   ;;  %s1492_s3 = inlined_call_operand.hbm [shape: bf16[512,128], index: 3, kind: input, shape index: {}]   ;;  %s1493_s4 = inlined_call_operand.vmem [shape: f32[1,128], index: 4, kind: input, shape index: {}]   ;;  %s1494_s5 = inlined_call_operand.hbm [shape: f32[16,128], index: 5, kind: output, shape index: {}]  }
   0x1   :  { %11 = vsyncpa [#allocation6], 0 }
   0x2   :  { %12 = vsyncpa [#allocation9], 0 }
   0x3   :  { %13 = vsyncpa [#allocation4], 0  ;;  %s1424_s18 = smov [#allocation5]  }
   0x4   :  { %s31_s19 = sshll.u32 %s1424_s18, 4  ;;  %s32_s19 = int_to_ptr.vmem [resolvable:$true] %s31_s19 }
   0x5   :  { %s1324_s20 = scalar_lea.vmem %s32_s19, 8192  ;;  %p1329_p1 = scmp.lt.s32.totalorder %s32_s19, %s32_s19 }
   0x6   :  { %p1325_p0 = scmp.ne.s32.totalorder %s32_s19, %s1324_s20  ;;  %p1330_p2 = scmp.lt.s32.totalorder %s1324_s20, %s1324_s20 }
   0x8   :  { %p1331_p3 = por %p1330_p2, %p1329_p1 }
   0xa   :  { %p1332_p4 = pnand %p1331_p3, %p1325_p0 }
   0xc   :  { %1335 = shalt.err (!%p1332_p4)
}
   0xd   :  { %s1425_s21 = smov 256   ;;  %s1426_s22 = smov 16  }
   0xe   :  { %37 = dma.hbm_to_vmem [thread:$0]  %s1490_s1, 8192, %s32_s19, [#allocation6], %s1425_s21, %s1425_s21, %s1426_s22  }
   0xf   :  { %s1427_s25 = smov [#allocation2]  }
  0x10   :  { %s19_s26 = sshll.u32 %s1427_s25, 4  ;;  %s20_s26 = int_to_ptr.vmem [resolvable:$true] %s19_s26 }
  0x11   :  { %s1344_s27 = scalar_lea.vmem %s20_s26, 256  ;;  %p1349_p6 = scmp.lt.s32.totalorder %s20_s26, %s20_s26 }
  0x12   :  { %p1345_p5 = scmp.ne.s32.totalorder %s20_s26, %s1344_s27  ;;  %p1350_p7 = scmp.lt.s32.totalorder %s1344_s27, %s1344_s27 }
  0x14   :  { %p1351_p8 = por %p1350_p7, %p1349_p6 }
  0x16   :  { %p1352_p9 = pnand %p1351_p8, %p1345_p5 }
  0x18   :  { %1355 = shalt.err (!%p1352_p9)
}
  0x19   :  { %s1428_s28 = smov 128   ;;  %s1429_s29 = smov 8  }
  0x1a   :  { %25 = dma.hbm_to_vmem [thread:$0]  %s1489_s0, 256, %s20_s26, [#allocation3], %s1428_s28, %s1428_s28, %s1429_s29  }
  0x1b   :  { %s1430_s1 = smov [#allocation7]   ;;  %s1431_s8 = smov [#allocation8]  }
  0x1c   :  { %s44_s7 = sshll.u32 %s1430_s1, 4  ;;  %s53_s9 = sshll.u32 %s1431_s8, 4  ;;  %s45_s7 = int_to_ptr.vmem [resolvable:$true] %s44_s7  ;;  %s54_s9 = int_to_ptr.vmem [resolvable:$true] %s53_s9 }
  0x1d   :  { %s1364_s10 = scalar_lea.vmem %s45_s7, 64  ;;  %p1369_p11 = scmp.lt.s32.totalorder %s45_s7, %s45_s7 }
  0x1e   :  { %p1365_p10 = scmp.ne.s32.totalorder %s45_s7, %s1364_s10  ;;  %p1370_p12 = scmp.lt.s32.totalorder %s1364_s10, %s1364_s10 }
  0x20   :  { %p1371_p13 = por %p1370_p12, %p1369_p11 }
  0x22   :  { %p1372_p0 = pnand %p1371_p13, %p1365_p10 }
  0x24   :  { %1375 = shalt.err (!%p1372_p0)
}
  0x25   :  { %47 = dma.hbm_to_vmem [thread:$0]  %s1491_s2, 64, %s45_s7, [#allocation6]  }
  0x26   :  { %s1384_s13 = scalar_lea.vmem %s54_s9, 4096  ;;  %p1389_p2 = scmp.lt.s32.totalorder %s54_s9, %s54_s9 }
  0x27   :  { %p1385_p1 = scmp.ne.s32.totalorder %s54_s9, %s1384_s13  ;;  %p1390_p3 = scmp.lt.s32.totalorder %s1384_s13, %s1384_s13 }
  0x29   :  { %p1391_p4 = por %p1390_p3, %p1389_p2 }
  0x2b   :  { %p1392_p5 = pnand %p1391_p4, %p1385_p1 }
  0x2d   :  { %1395 = shalt.err (!%p1392_p5)
}
  0x2e   :  { %s1432_s0 = smov 64   ;;  %s1433_s14 = smov 4  }
  0x2f   :  { %59 = dma.hbm_to_vmem [thread:$0]  %s1492_s3, 4096, %s54_s9, [#allocation9], %s1432_s0, %s1432_s0, %s1433_s14  }
  0x30   :  { %1416 = dma.done.wait [#allocation3], 256  }
  0x31   :  { %1417 = vsyncadd [#allocation3], 4294967040 }
  0x32   :  { %1418 = dma.done.wait [#allocation6], 8256  }
  0x33   :  { %1419 = vsyncadd [#allocation6], 4294959040 }
  0x34   :  { %1420 = dma.done.wait [#allocation9], 4096  }
  0x35   :  { %1421 = vsyncadd [#allocation9], 4294963200  ;;  %v1161_v0 = vld [vmem:[#allocation5 + $0xe4] ss:$16 sps:$4 sm:$0xff]   ;;  %v1163_v1 = vld [vmem:[#allocation5 + $0xec] ss:$16 sps:$4 sm:$0xff]  }
  0x36   :  { %493 = vmatprep.subr.bf16.mxu0 %v1161_v0  ;;  %v1165_v2 = vld [vmem:[#allocation5 + $0xe0] ss:$16 sps:$4 sm:$0xff]   ;;  %v1166_v3 = vld [vmem:[#allocation5 + $0xe8] ss:$16 sps:$4 sm:$0xff]   ;;  %536 = vmatprep.subr.bf16.mxu1 %v1163_v1  ;;  %v1167_v4 = vld [vmem:[#allocation5 + $0xc4] ss:$16 sps:$4 sm:$0xff]  }
  0x37   :  { %494 = vmatpush1.bf16.msra.mxu0 %v1165_v2  ;;  %537 = vmatpush1.bf16.msra.mxu1 %v1166_v3  ;;  %v1169_v5 = vld [vmem:[#allocation5 + $0xcc] ss:$16 sps:$4 sm:$0xff]   ;;  %v1171_v6 = vld [vmem:[#allocation5 + $0xc0] ss:$16 sps:$4 sm:$0xff]   ;;  %v1172_v7 = vld [vmem:[#allocation5 + $0xc8] ss:$16 sps:$4 sm:$0xff]  }
  0x38   :  { %495 = vmatprep.subr.bf16.mxu0 %v1167_v4  ;;  %538 = vmatprep.subr.bf16.mxu1 %v1169_v5  ;;  %v1173_v8 = vld [vmem:[#allocation5 + $0xa4] ss:$16 sps:$4 sm:$0xff]   ;;  %v1175_v9 = vld [vmem:[#allocation5 + $0xac] ss:$16 sps:$4 sm:$0xff]   ;;  %v1177_v10 = vld [vmem:[#allocation5 + $0xa0] ss:$16 sps:$4 sm:$0xff]  }
  0x39   :  { %v1178_v11 = vld [vmem:[#allocation5 + $0xa8] ss:$16 sps:$4 sm:$0xff]   ;;  %v1179_v12 = vld [vmem:[#allocation5 + $0x84] ss:$16 sps:$4 sm:$0xff]   ;;  %v1181_v13 = vld [vmem:[#allocation5 + $0x8c] ss:$16 sps:$4 sm:$0xff]  }
  0x3a   :  { %v1183_v14 = vld [vmem:[#allocation5 + $0x80] ss:$16 sps:$4 sm:$0xff]   ;;  %v1184_v15 = vld [vmem:[#allocation5 + $0x88] ss:$16 sps:$4 sm:$0xff]   ;;  %v1185_v16 = vld [vmem:[#allocation5 + $0x64] ss:$16 sps:$4 sm:$0xff]  }
  0x3b   :  { %496 = vmatpush1.bf16.msra.mxu0 %v1171_v6  ;;  %539 = vmatpush1.bf16.msra.mxu1 %v1172_v7  ;;  %v1187_v17 = vld [vmem:[#allocation5 + $0x6c] ss:$16 sps:$4 sm:$0xff]   ;;  %v1189_v18 = vld [vmem:[#allocation5 + $0x60] ss:$16 sps:$4 sm:$0xff]   ;;  %v1190_v19 = vld [vmem:[#allocation5 + $0x68] ss:$16 sps:$4 sm:$0xff]  }
  0x3c   :  { %497 = vmatprep.subr.bf16.mxu0 %v1173_v8  ;;  %540 = vmatprep.subr.bf16.mxu1 %v1175_v9  ;;  %v1191_v20 = vld [vmem:[#allocation5 + $0x44] ss:$16 sps:$4 sm:$0xff]   ;;  %v1193_v21 = vld [vmem:[#allocation5 + $0x4c] ss:$16 sps:$4 sm:$0xff]   ;;  %v1195_v22 = vld [vmem:[#allocation5 + $0x40] ss:$16 sps:$4 sm:$0xff]  }
  0x3d   :  { %v1196_v23 = vld [vmem:[#allocation5 + $0x48] ss:$16 sps:$4 sm:$0xff]   ;;  %v1197_v24 = vld [vmem:[#allocation5 + $0x24] ss:$16 sps:$4 sm:$0xff]   ;;  %v1199_v25 = vld [vmem:[#allocation5 + $0x2c] ss:$16 sps:$4 sm:$0xff]  }
  0x3e   :  { %v1201_v26 = vld [vmem:[#allocation5 + $0x20] ss:$16 sps:$4 sm:$0xff]   ;;  %v1202_v27 = vld [vmem:[#allocation5 + $0x28] ss:$16 sps:$4 sm:$0xff]   ;;  %v1203_v28 = vld [vmem:[#allocation5 + $0x4] ss:$16 sps:$4 sm:$0xff]  }
  0x3f   :  { %498 = vmatpush1.bf16.msra.mxu0 %v1177_v10  ;;  %541 = vmatpush1.bf16.msra.mxu1 %v1178_v11  ;;  %v1205_v29 = vld [vmem:[#allocation5 + $0xc] ss:$16 sps:$4 sm:$0xff]   ;;  %v1207_v30 = vld [vmem:[#allocation5] ss:$16 sps:$4 sm:$0xff]   ;;  %v1208_v31 = vld [vmem:[#allocation5 + $0x8] ss:$16 sps:$4 sm:$0xff]  }
  0x40   :  { %499 = vmatprep.subr.bf16.mxu0 %v1179_v12  ;;  %542 = vmatprep.subr.bf16.mxu1 %v1181_v13  ;;  %v1209_v32 = vld [vmem:[#allocation5 + $0x1e4] ss:$16 sps:$4 sm:$0xff]   ;;  %v1211_v33 = vld [vmem:[#allocation5 + $0x1ec] ss:$16 sps:$4 sm:$0xff]   ;;  %v1213_v34 = vld [vmem:[#allocation5 + $0x1e0] ss:$16 sps:$4 sm:$0xff]  }
  0x41   :  { %v1214_v35 = vld [vmem:[#allocation5 + $0x1e8] ss:$16 sps:$4 sm:$0xff]   ;;  %v1215_v36 = vld [vmem:[#allocation5 + $0x1c4] ss:$16 sps:$4 sm:$0xff]   ;;  %v1217_v37 = vld [vmem:[#allocation5 + $0x1cc] ss:$16 sps:$4 sm:$0xff]  }
  0x42   :  { %v1219_v38 = vld [vmem:[#allocation5 + $0x1c0] ss:$16 sps:$4 sm:$0xff]   ;;  %v1220_v39 = vld [vmem:[#allocation5 + $0x1c8] ss:$16 sps:$4 sm:$0xff]   ;;  %v1221_v40 = vld [vmem:[#allocation5 + $0x1a4] ss:$16 sps:$4 sm:$0xff]  }
  0x43   :  { %500 = vmatpush1.bf16.msra.mxu0 %v1183_v14  ;;  %543 = vmatpush1.bf16.msra.mxu1 %v1184_v15  ;;  %v1223_v41 = vld [vmem:[#allocation5 + $0x1ac] ss:$16 sps:$4 sm:$0xff]   ;;  %v1225_v42 = vld [vmem:[#allocation5 + $0x1a0] ss:$16 sps:$4 sm:$0xff]   ;;  %v1226_v43 = vld [vmem:[#allocation5 + $0x1a8] ss:$16 sps:$4 sm:$0xff]  }
  0x44   :  { %501 = vmatprep.subr.bf16.mxu0 %v1185_v16  ;;  %544 = vmatprep.subr.bf16.mxu1 %v1187_v17  ;;  %v1227_v44 = vld [vmem:[#allocation5 + $0x184] ss:$16 sps:$4 sm:$0xff]   ;;  %v1229_v45 = vld [vmem:[#allocation5 + $0x18c] ss:$16 sps:$4 sm:$0xff]   ;;  %v1231_v46 = vld [vmem:[#allocation5 + $0x180] ss:$16 sps:$4 sm:$0xff]  }
  0x45   :  { %v1232_v47 = vld [vmem:[#allocation5 + $0x188] ss:$16 sps:$4 sm:$0xff]   ;;  %v1233_v48 = vld [vmem:[#allocation5 + $0x164] ss:$16 sps:$4 sm:$0xff]   ;;  %v1235_v50 = vld [vmem:[#allocation5 + $0x16c] ss:$16 sps:$4 sm:$0xff]  }
  0x46   :  { %v1259_v49 = vld [vmem:[#allocation2 + $0x4] ss:$8 sps:$4 sm:$0xff]   ;;  %v1237_v51 = vld [vmem:[#allocation5 + $0x160] ss:$16 sps:$4 sm:$0xff]   ;;  %v1238_v52 = vld [vmem:[#allocation5 + $0x168] ss:$16 sps:$4 sm:$0xff]  }
  0x47   :  { %502 = vmatpush1.bf16.msra.mxu0 %v1189_v18  ;;  %545 = vmatpush1.bf16.msra.mxu1 %v1190_v19  ;;  %v1239_v53 = vld [vmem:[#allocation5 + $0x144] ss:$16 sps:$4 sm:$0xff]   ;;  %v1241_v54 = vld [vmem:[#allocation5 + $0x14c] ss:$16 sps:$4 sm:$0xff]   ;;  %v1243_v55 = vld [vmem:[#allocation5 + $0x140] ss:$16 sps:$4 sm:$0xff]  }
  0x48   :  { %503 = vmatprep.subr.bf16.mxu0 %v1191_v20  ;;  %546 = vmatprep.subr.bf16.mxu1 %v1193_v21  ;;  %v1244_v56 = vld [vmem:[#allocation5 + $0x148] ss:$16 sps:$4 sm:$0xff]   ;;  %v1245_v57 = vld [vmem:[#allocation5 + $0x124] ss:$16 sps:$4 sm:$0xff]   ;;  %v1247_v58 = vld [vmem:[#allocation5 + $0x12c] ss:$16 sps:$4 sm:$0xff]  }
  0x49   :  { %525 = vmatprep.mubr.bf16.mxu0 %v1259_v49  ;;  %568 = vmatprep.mubr.bf16.mxu1 %v1259_v49  ;;  %v1249_v59 = vld [vmem:[#allocation5 + $0x120] ss:$16 sps:$4 sm:$0xff]   ;;  %v1250_v60 = vld [vmem:[#allocation5 + $0x128] ss:$16 sps:$4 sm:$0xff]   ;;  %v1251_v61 = vld [vmem:[#allocation5 + $0x104] ss:$16 sps:$4 sm:$0xff]  }
  0x4a   :  { %v1253_v62 = vld [vmem:[#allocation5 + $0x10c] ss:$16 sps:$4 sm:$0xff]   ;;  %v1255_v63 = vld [vmem:[#allocation5 + $0x100] ss:$16 sps:$4 sm:$0xff]   ;;  %v1256_v0 = vld [vmem:[#allocation5 + $0x108] ss:$16 sps:$4 sm:$0xff]  }
  0x4b   :  { %504 = vmatpush1.bf16.msra.mxu0 %v1195_v22  ;;  %547 = vmatpush1.bf16.msra.mxu1 %v1196_v23  ;;  %v1257_v1 = vld [vmem:[#allocation2] ss:$8 sps:$4 sm:$0xff]   ;;  %v1260_v2 = vld [vmem:[#allocation8 + $0x78] sm:$0xff]   ;;  %v1272_v14 = vld [vmem:[#allocation8 + $0x60] sm:$0xff]  }
  0x4c   :  { %505 = vmatprep.subr.bf16.mxu0 %v1197_v24  ;;  %548 = vmatprep.subr.bf16.mxu1 %v1199_v25  ;;  %v1261_v3 = vld [vmem:[#allocation8 + $0xf8] sm:$0xff]   ;;  %v1264_v6 = vld [vmem:[#allocation8 + $0x70] sm:$0xff]   ;;  %v1268_v10 = vld [vmem:[#allocation8 + $0x68] sm:$0xff]  }
  0x4d   :  { %v1262_v4 = vld [vmem:[#allocation8 + $0x38] sm:$0xff]   ;;  %v1265_v7 = vld [vmem:[#allocation8 + $0xf0] sm:$0xff]   ;;  %v1269_v11 = vld [vmem:[#allocation8 + $0xe8] sm:$0xff]  }
  0x4e   :  { %v1263_v5 = vld [vmem:[#allocation8 + $0xb8] sm:$0xff]   ;;  %v1266_v8 = vld [vmem:[#allocation8 + $0x30] sm:$0xff]   ;;  %v1270_v12 = vld [vmem:[#allocation8 + $0x28] sm:$0xff]  }
  0x4f   :  { %506 = vmatpush1.bf16.msra.mxu0 %v1201_v26  ;;  %549 = vmatpush1.bf16.msra.mxu1 %v1202_v27  ;;  %v1267_v9 = vld [vmem:[#allocation8 + $0xb0] sm:$0xff]   ;;  %v1271_v13 = vld [vmem:[#allocation8 + $0xa8] sm:$0xff]   ;;  %v1273_v15 = vld [vmem:[#allocation8 + $0xe0] sm:$0xff]  }
  0x50   :  { %507 = vmatprep.subr.bf16.mxu0 %v1203_v28  ;;  %550 = vmatprep.subr.bf16.mxu1 %v1205_v29  ;;  %v1274_v16 = vld [vmem:[#allocation8 + $0x20] sm:$0xff]   ;;  %v1276_v18 = vld [vmem:[#allocation8 + $0x58] sm:$0xff]   ;;  %v1280_v22 = vld [vmem:[#allocation8 + $0x50] sm:$0xff]  }
  0x51   :  { %v1275_v17 = vld [vmem:[#allocation8 + $0xa0] sm:$0xff]   ;;  %v1277_v19 = vld [vmem:[#allocation8 + $0xd8] sm:$0xff]   ;;  %v1281_v23 = vld [vmem:[#allocation8 + $0xd0] sm:$0xff]  }
  0x52   :  { %v1278_v20 = vld [vmem:[#allocation8 + $0x18] sm:$0xff]   ;;  %v1282_v24 = vld [vmem:[#allocation8 + $0x10] sm:$0xff]   ;;  %v1284_v26 = vld [vmem:[#allocation8 + $0x48] sm:$0xff]  }
  0x53   :  { %508 = vmatpush1.bf16.msra.mxu0 %v1207_v30  ;;  %551 = vmatpush1.bf16.msra.mxu1 %v1208_v31  ;;  %v1279_v21 = vld [vmem:[#allocation8 + $0x98] sm:$0xff]   ;;  %v1283_v25 = vld [vmem:[#allocation8 + $0x90] sm:$0xff]   ;;  %v1285_v27 = vld [vmem:[#allocation8 + $0xc8] sm:$0xff]  }
  0x54   :  { %509 = vmatprep.subr.bf16.mxu0 %v1209_v32  ;;  %552 = vmatprep.subr.bf16.mxu1 %v1211_v33  ;;  %v1286_v28 = vld [vmem:[#allocation8 + $0x8] sm:$0xff]   ;;  %v1288_v30 = vld [vmem:[#allocation8 + $0x40] sm:$0xff]  }
  0x55   :  { %v1287_v29 = vld [vmem:[#allocation8 + $0x88] sm:$0xff]   ;;  %v1289_v31 = vld [vmem:[#allocation8 + $0xc0] sm:$0xff]  }
  0x56   :  { %v1290_v32 = vld [vmem:[#allocation8] sm:$0xff]  }
  0x57   :  { %510 = vmatpush2.bf16.msra.mxu0 %v1213_v34  ;;  %553 = vmatpush2.bf16.msra.mxu1 %v1214_v35  ;;  %v1291_v33 = vld [vmem:[#allocation8 + $0x80] sm:$0xff]   ;;  %v143_v34 = vlaneseq }
  0x58   :  { %511 = vmatprep.subr.bf16.mxu0 %v1215_v36  ;;  %554 = vmatprep.subr.bf16.mxu1 %v1217_v37 }
  0x59   :  { %v144_v35 = vshrl.u32 %v143_v34, 7 }
  0x5b   :  { %512 = vmatpush2.bf16.msra.mxu0 %v1219_v38  ;;  %555 = vmatpush2.bf16.msra.mxu1 %v1220_v39  ;;  %v145_v36 = vsub.s32 0, %v144_v35  ;;  %v153_v37 = vsub.s32 2, %v144_v35  ;;  %v141_v38 = vld [vmem:[#allocation7] sm:$0xf]  ;;  %v149_v39 = vsub.s32 1, %v144_v35 }
  0x5c   :  { %513 = vmatprep.subr.bf16.mxu0 %v1221_v40  ;;  %556 = vmatprep.subr.bf16.mxu1 %v1223_v41  ;;  %v157_v40 = vsub.s32 3, %v144_v35 }
  0x5d   :  { %v146_v41 = vrot.slane %v141_v38, %v145_v36 }
  0x5f   :  { %514 = vmatpush2.bf16.msra.mxu0 %v1225_v42  ;;  %557 = vmatpush2.bf16.msra.mxu1 %v1226_v43  ;;  %v154_v42 = vrot.slane %v141_v38, %v153_v37 }
  0x60   :  { %515 = vmatprep.subr.bf16.mxu0 %v1227_v44  ;;  %558 = vmatprep.subr.bf16.mxu1 %v1229_v45  ;;  %v150_v45 = vrot.slane %v141_v38, %v149_v39 }
  0x63   :  { %516 = vmatpush2.bf16.msra.mxu0 %v1231_v46  ;;  %559 = vmatpush2.bf16.msra.mxu1 %v1232_v47  ;;  %v158_v46 = vrot.slane %v141_v38, %v157_v40 }
  0x64   :  { %517 = vmatprep.subr.bf16.mxu0 %v1233_v48  ;;  %560 = vmatprep.subr.bf16.mxu1 %v1235_v50 }
  0x67   :  { %518 = vmatpush2.bf16.msra.mxu0 %v1237_v51  ;;  %561 = vmatpush2.bf16.msra.mxu1 %v1238_v52 }
  0x68   :  { %519 = vmatprep.subr.bf16.mxu0 %v1239_v53  ;;  %562 = vmatprep.subr.bf16.mxu1 %v1241_v54 }
  0x6b   :  { %520 = vmatpush2.bf16.msra.mxu0 %v1243_v55  ;;  %563 = vmatpush2.bf16.msra.mxu1 %v1244_v56 }
  0x6c   :  { %521 = vmatprep.subr.bf16.mxu0 %v1245_v57  ;;  %564 = vmatprep.subr.bf16.mxu1 %v1247_v58 }
  0x6f   :  { %522 = vmatpush2.bf16.msra.mxu0 %v1249_v59  ;;  %565 = vmatpush2.bf16.msra.mxu1 %v1250_v60 }
  0x70   :  { %523 = vmatprep.subr.bf16.mxu0 %v1251_v61  ;;  %566 = vmatprep.subr.bf16.mxu1 %v1253_v62 }
  0x73   :  { %524 = vmatpush2.bf16.msra.mxu0 %v1255_v63  ;;  %567 = vmatpush2.bf16.msra.mxu1 %v1256_v0 }
  0x74   :  { %1106 = vmatprep.subr.bf16.mxu0 %v1260_v2  ;;  %1128 = vmatprep.subr.bf16.mxu1 %v1261_v3 }
  0x76   :  { %526 = vmatmul.mubr.bf16.vlgmr.msra.gmra.mxu0 %v1257_v1  ;;  %569 = vmatmul.mubr.bf16.vlgmr.msra.gmra.mxu1 %v1257_v1 }
  0x77   :  { %1107 = vmatpush3.bf16.msra.mxu0 %v1262_v4  ;;  %1129 = vmatpush3.bf16.msra.mxu1 %v1263_v5 }
  0x78   :  { %1108 = vmatprep.subr.bf16.mxu0 %v1264_v6  ;;  %1130 = vmatprep.subr.bf16.mxu1 %v1265_v7 }
  0x7b   :  { %1109 = vmatpush3.bf16.msra.mxu0 %v1266_v8  ;;  %1131 = vmatpush3.bf16.msra.mxu1 %v1267_v9 }
  0x7c   :  { %1110 = vmatprep.subr.bf16.mxu0 %v1268_v10  ;;  %1132 = vmatprep.subr.bf16.mxu1 %v1269_v11 }
  0x7f   :  { %1111 = vmatpush3.bf16.msra.mxu0 %v1270_v12  ;;  %1133 = vmatpush3.bf16.msra.mxu1 %v1271_v13 }
  0x80   :  { %1112 = vmatprep.subr.bf16.mxu0 %v1272_v14  ;;  %1134 = vmatprep.subr.bf16.mxu1 %v1273_v15 }
  0x83   :  { %1113 = vmatpush3.bf16.msra.mxu0 %v1274_v16  ;;  %1135 = vmatpush3.bf16.msra.mxu1 %v1275_v17 }
  0x84   :  { %1114 = vmatprep.subr.bf16.mxu0 %v1276_v18  ;;  %1136 = vmatprep.subr.bf16.mxu1 %v1277_v19 }
  0x87   :  { %1115 = vmatpush3.bf16.msra.mxu0 %v1278_v20  ;;  %1137 = vmatpush3.bf16.msra.mxu1 %v1279_v21 }
  0x88   :  { %1116 = vmatprep.subr.bf16.mxu0 %v1280_v22  ;;  %1138 = vmatprep.subr.bf16.mxu1 %v1281_v23 }
  0x8b   :  { %1117 = vmatpush3.bf16.msra.mxu0 %v1282_v24  ;;  %1139 = vmatpush3.bf16.msra.mxu1 %v1283_v25 }
  0x8c   :  { %1118 = vmatprep.subr.bf16.mxu0 %v1284_v26  ;;  %1140 = vmatprep.subr.bf16.mxu1 %v1285_v27 }
  0x8f   :  { %1119 = vmatpush3.bf16.msra.mxu0 %v1286_v28  ;;  %1141 = vmatpush3.bf16.msra.mxu1 %v1287_v29 }
  0x90   :  { %1120 = vmatprep.subr.bf16.mxu0 %v1288_v30  ;;  %1142 = vmatprep.subr.bf16.mxu1 %v1289_v31 }
  0x93   :  { %1121 = vmatpush3.bf16.msra.mxu0 %v1290_v32  ;;  %1143 = vmatpush3.bf16.msra.mxu1 %v1291_v33 }
 0x136   :  { %v527_v43 = vpop.f32.mrf.mxu0  ;;  %v570_v44 = vpop.f32.mrf.mxu1 }
 0x137   :  { %v528_v47 = vadd.f32 %v527_v43, %v146_v41  ;;  %v571_v48 = vadd.f32 %v570_v44, %v154_v42  ;;  %v1073_v43 = vld [vmem:[%s1493_s4] ss:$0 sm:$0xff]  ;;  %s1434_s4 = smov [#allocation10]  }
 0x138   :  { %v529_v49 = vpop.f32.mrf.mxu0  ;;  %v572_v50 = vpop.f32.mrf.mxu1  ;;  %s993_s17 = sshll.u32 %s1434_s4, 4  ;;  %s994_s17 = int_to_ptr.vmem [resolvable:$true] %s993_s17 }
 0x139   :  { %v587_v51 = vmul.f32 0.70710677, %v528_v47  ;;  %v589_v52 = vmul.f32 0.70710677, %v571_v48  ;;  %v530_v53 = vadd.f32 %v529_v49, %v150_v45  ;;  %v573_v54 = vadd.f32 %v572_v50, %v158_v46  ;;  %s1396_s18 = scalar_lea.vmem %s994_s17, 256  ;;  %p1401_p7 = scmp.lt.s32.totalorder %s994_s17, %s994_s17 }
 0x13a   :  { %v531_v55 = vpop.f32.mrf.mxu0  ;;  %v574_v56 = vpop.f32.mrf.mxu1  ;;  %v579_v11 = vmul.f32 0.5, %v528_v47  ;;  %v581_v29 = vmul.f32 0.5, %v571_v48  ;;  %p1397_p6 = scmp.ne.s32.totalorder %s994_s17, %s1396_s18  ;;  %p1402_p8 = scmp.lt.s32.totalorder %s1396_s18, %s1396_s18 }
 0x13b   :  { %v532_v57 = vadd.f32 %v531_v55, %v146_v41  ;;  %v575_v58 = vadd.f32 %v574_v56, %v154_v42  ;;  %1292 = verf.f32 %v587_v51  ;;  %v588_v59 = vmul.f32 0.70710677, %v530_v53 }
 0x13c   :  { %v533_v60 = vpop.f32.mrf.mxu0  ;;  %v576_v61 = vpop.f32.mrf.mxu1  ;;  %1294 = verf.f32 %v589_v52  ;;  %v590_v62 = vmul.f32 0.70710677, %v573_v54  ;;  %v580_v12 = vmul.f32 0.5, %v530_v53  ;;  %v582_v25 = vmul.f32 0.5, %v573_v54  ;;  %p1403_p9 = por %p1402_p8, %p1401_p7 }
 0x13d   :  { %v591_v63 = vmul.f32 0.70710677, %v532_v57  ;;  %1296 = verf.f32 %v588_v59  ;;  %v593_v0 = vmul.f32 0.70710677, %v575_v58  ;;  %v534_v1 = vadd.f32 %v533_v60, %v150_v45 }
 0x13e   :  { %v577_v2 = vadd.f32 %v576_v61, %v158_v46  ;;  %1298 = verf.f32 %v590_v62  ;;  %v583_v18 = vmul.f32 0.5, %v532_v57  ;;  %v585_v22 = vmul.f32 0.5, %v575_v58  ;;  %p1404_p10 = pnand %p1403_p9, %p1397_p6 }
 0x13f   :  { %1300 = verf.f32 %v591_v63  ;;  %v592_v3 = vmul.f32 0.70710677, %v534_v1  ;;  %v584_v23 = vmul.f32 0.5, %v534_v1 }
 0x140   :  { %1302 = verf.f32 %v593_v0  ;;  %v594_v4 = vmul.f32 0.70710677, %v577_v2  ;;  %v586_v27 = vmul.f32 0.5, %v577_v2 }
 0x141   :  { %1304 = verf.f32 %v592_v3 }
 0x142   :  { %1306 = verf.f32 %v594_v4 }
 0x148   :  { %v1293_v5 = vpop.eup %1292 }
 0x149   :  { %v1295_v6 = vpop.eup %1294  ;;  %v603_v16 = vadd.f32 1.0, %v1293_v5 }
 0x14a   :  { %v1297_v7 = vpop.eup %1296  ;;  %v605_v21 = vadd.f32 1.0, %v1295_v6 }
 0x14b   :  { %v1299_v8 = vpop.eup %1298  ;;  %v604_v13 = vadd.f32 1.0, %v1297_v7  ;;  %v611_v33 = vmul.f32 %v603_v16, %v579_v11 }
 0x14c   :  { %v1301_v9 = vpop.eup %1300  ;;  %v606_v17 = vadd.f32 1.0, %v1299_v8  ;;  %v613_v36 = vmul.f32 %v605_v21, %v581_v29 }
 0x14d   :  { %v1303_v10 = vpop.eup %1302  ;;  %v607_v14 = vadd.f32 1.0, %v1301_v9  ;;  %v612_v30 = vmul.f32 %v604_v13, %v580_v12 }
 0x14e   :  { %v1305_v15 = vpop.eup %1304  ;;  %v609_v19 = vadd.f32 1.0, %v1303_v10  ;;  %v614_v34 = vmul.f32 %v606_v17, %v582_v25 }
 0x14f   :  { %v1307_v20 = vpop.eup %1306  ;;  %v608_v24 = vadd.f32 1.0, %v1305_v15  ;;  %v615_v26 = vmul.f32 %v607_v14, %v583_v18 }
 0x150   :  { %v610_v28 = vadd.f32 1.0, %v1307_v20  ;;  %v617_v31 = vmul.f32 %v609_v19, %v585_v22 }
 0x151   :  { %v616_v32 = vmul.f32 %v608_v24, %v584_v23  ;;  %v619_v38 = vpack.c.bf16 %v615_v26, %v611_v33 }
 0x152   :  { %v618_v35 = vmul.f32 %v610_v28, %v586_v27  ;;  %v621_v40 = vpack.c.bf16 %v617_v31, %v613_v36 }
 0x153   :  { %v620_v37 = vpack.c.bf16 %v616_v32, %v612_v30 }
 0x154   :  { %v622_v39 = vpack.c.bf16 %v618_v35, %v614_v34 }
 0x155   :  { %918 = vmatprep.mubr.bf16.mxu0 %v620_v37 }
 0x156   :  { %959 = vmatprep.mubr.bf16.mxu1 %v622_v39  ;;  %919 = vmatmul.mubr.bf16.vlgmr.msra.gmra.mxu0 %v619_v38 }
 0x157   :  { %960 = vmatmul.mubr.bf16.vlgmr.msra.gmra.mxu1 %v621_v40 }
 0x216   :  { %v1122_v41 = vpop.f32.mrf.mxu0 }
 0x217   :  { %v1144_v42 = vpop.f32.mrf.mxu1 }
 0x218   :  { %v1123_v44 = vpop.f32.mrf.mxu0 }
 0x219   :  { %v1124_v45 = vadd.f32 %v1123_v44, %v1122_v41  ;;  %v1145_v46 = vpop.f32.mrf.mxu1 }
 0x21a   :  { %v1125_v47 = vpop.f32.mrf.mxu0  ;;  %v1146_v49 = vadd.f32 %v1145_v46, %v1144_v42 }
 0x21b   :  { %v921_v48 = vadd.f32 %v1124_v45, %v1073_v43  ;;  %v1147_v50 = vpop.f32.mrf.mxu1 }
 0x21c   :  { %v1126_v51 = vpop.f32.mrf.mxu0 }
 0x21d   :  { %v1127_v52 = vadd.f32 %v1126_v51, %v1125_v47  ;;  %v1148_v53 = vpop.f32.mrf.mxu1  ;;  %v962_v54 = vadd.f32 %v1146_v49, %v921_v48 }
 0x21e   :  { %v1149_v56 = vadd.f32 %v1148_v53, %v1147_v50 }
 0x21f   :  { %v924_v55 = vadd.f32 %v1127_v52, %v1073_v43  ;;  %968 = vmax.xlane.f32.xlu0 %v962_v54 }
 0x221   :  { %v965_v57 = vadd.f32 %v1149_v56, %v924_v55 }
 0x223   :  { %970 = vmax.xlane.f32.xlu0 %v965_v57 }
 0x2a8   :  { %v969_v58 = vpop.xlane.xlu0 %968 }
 0x2a9   :  { %v972_v59 = vsub.f32 %v962_v54, %v969_v58 }
 0x2ab   :  { %v974_v60 = vmul.f32 1.442695, %v972_v59 }
 0x2ac   :  { %v971_v61 = vpop.xlane.xlu0 %970 }
 0x2ad   :  { %1308 = vpow2.f32 %v974_v60  ;;  %v973_v62 = vsub.f32 %v965_v57, %v971_v61 }
 0x2af   :  { %v976_v63 = vmul.f32 1.442695, %v973_v62 }
 0x2b1   :  { %1310 = vpow2.f32 %v976_v63 }
 0x2ba   :  { %v1309_v0 = vpop.eup %1308 }
 0x2bb   :  { %978 = vadd.xlane.f32.xlu1 %v1309_v0 }
 0x2be   :  { %v1311_v1 = vpop.eup %1310 }
 0x2bf   :  { %980 = vadd.xlane.f32.xlu1 %v1311_v1 }
 0x344   :  { %v979_v2 = vpop.xlane.xlu1 %978 }
 0x345   :  { %1312 = vrcp.f32 %v979_v2 }
 0x348   :  { %v981_v3 = vpop.xlane.xlu1 %980 }
 0x349   :  { %1314 = vrcp.f32 %v981_v3 }
 0x352   :  { %v1313_v4 = vpop.eup %1312 }
 0x353   :  { %v984_v5 = vmul.f32 %v1313_v4, %v1309_v0 }
 0x355   :  { %986 = vst [vmem:[#allocation10] sm:$0xff] %v984_v5 }
 0x356   :  { %v1315_v6 = vpop.eup %1314 }
 0x357   :  { %v985_v7 = vmul.f32 %v1315_v6, %v1311_v1 }
 0x359   :  { %987 = vst [vmem:[#allocation10 + $0x8] sm:$0xff] %v985_v7 }
 0x35a   :  { %1407 = shalt.err (!%p1404_p10)
}
 0x35b   :  { %999 = dma.vmem_to_hbm [thread:$0]  %s994_s17, 256, %s1494_s5, [#allocation4], %s1428_s28, %s1428_s28, %s1429_s29  }
 0x35c   :  { %1422 = dma.done.wait [#allocation4], 256  }
 0x35d   :  { %1423 = vsyncadd [#allocation4], 4294967040 }
 0x35e   :  { %1003 = vsyncpa [#allocation3], 1 }
 0x35f   :  { %1004 = vsyncpa [#allocation6], 1 }
 0x360   :  { %1005 = vsyncpa [#allocation9], 1 }
 0x361   :  { %1006 = vsyncpa [#allocation4], 1 }

</bundles_post_ra>
